<compile_context>
chip_gen: v6e
topology: v6e:2x2x1
jax: 0.10.0
libtpu: 0.0.40
codegen_flags: <defaults>
</compile_context>

<pallas_src>
import functools

import jax
import jax.numpy as jnp
from jax import lax
from jax.experimental import pallas as pl
from jax.experimental.pallas import tpu as pltpu


def _round_up(n, m):
    return ((n + m - 1) // m) * m


def _fused_kernel(x_ref, w1_ref, vec_ref, o_ref, *, bc, h, n1, n2, n3):
    """Single grid step computing all three ConvLayer stages.

    x_ref   : (M, Kin)   flattened (B*C*H, 150) input (unpadded K; Mosaic masks the remainder)
    w1_ref  : (Kin, Np)  transposed conv1 weight, out-features zero-padded to 128 lanes
    vec_ref : (8, Np)    packed small vectors: row0=b1, row1=rowsum(w2), row2=b2,
                         row3=rowsum(w3), row4=b3 (padded entries are exactly zero)
    o_ref   : (bc, Np)   lane 0/1/2 = pooled output of layer 1/2/3 per (b, c) slab
    """
    npad = w1_ref.shape[1]

    # ---- layer 1: relu(x @ w1.T + b1), mean over (H, n1) per (b, c) slab ----
    y = jnp.dot(x_ref[...], w1_ref[...], preferred_element_type=jnp.float32)   # (M, Np) MXU
    y = jnp.maximum(y + vec_ref[0:1, :], 0.0)                                   # padded cols stay 0

    # Per-(b,c) row sum: layout-preserving sublane split (M,Np)->(bc,H,Np) + sublane reduce.
    z = jnp.sum(y.reshape(bc, h, npad), axis=1)                                 # (bc, Np)
    v1 = jnp.sum(z, axis=1, keepdims=True) * (1.0 / (h * n1))                   # true divisor, not padded

    # ---- layers 2/3 ----
    # The pooled (B,C,1,1) scalar is broadcast across the expected in_features, so
    # x @ w.T degenerates to v * rowsum(w); rowsums are precomputed on the host.
    # NOTE: this relies on the broadcast-input deviation documented in model_forward;
    # if the input shapes of conv2/conv3 are ever fixed, this epilogue must revert to a matmul.
    y2 = jnp.maximum(v1 * vec_ref[1:2, :] + vec_ref[2:3, :], 0.0)               # (bc, Np) VPU
    v2 = jnp.sum(y2, axis=1, keepdims=True) * (1.0 / n2)
    y3 = jnp.maximum(v2 * vec_ref[3:4, :] + vec_ref[4:5, :], 0.0)               # (bc, Np) VPU
    v3 = jnp.sum(y3, axis=1, keepdims=True) * (1.0 / n3)

    # ---- single lane-dense output store (lanes 0/1/2 carry v1/v2/v3, rest zero) ----
    lane = lax.broadcasted_iota(jnp.int32, o_ref.shape, 1)
    o_ref[...] = jnp.where(lane == 0, v1,
                           jnp.where(lane == 1, v2,
                                     jnp.where(lane == 2, v3, 0.0)))


def prepare_params(params):
    """One-time host-side weight prep: transpose, rowsum, pack small vectors, zero-pad lanes."""
    (w1, b1), (w2, b2), (w3, b3) = params
    n1, kin = w1.shape                      # conv1: Linear(150, 75)
    n2 = w2.shape[0]                        # conv2: Linear(60, 30)
    n3 = w3.shape[0]                        # conv3: Linear(80, 40)
    npad = _round_up(max(n1, n2, n3), 128)  # 128

    # conv1 weight, transposed to (Kin, Np); padded out-feature columns are exactly zero.
    wt1 = jnp.zeros((kin, npad), jnp.float32).at[:, :n1].set(jnp.asarray(w1, jnp.float32).T)

    # Pack the five small vectors into one sublane-aligned (8, Np) array (one DMA).
    vecs = jnp.zeros((8, npad), jnp.float32)
    vecs = vecs.at[0, :n1].set(jnp.asarray(b1, jnp.float32))
    vecs = vecs.at[1, :n2].set(jnp.sum(jnp.asarray(w2, jnp.float32), axis=1))
    vecs = vecs.at[2, :n2].set(jnp.asarray(b2, jnp.float32))
    vecs = vecs.at[3, :n3].set(jnp.sum(jnp.asarray(w3, jnp.float32), axis=1))
    vecs = vecs.at[4, :n3].set(jnp.asarray(b3, jnp.float32))

    arrays = (wt1, vecs)
    dims = (n1, n2, n3)                     # true (unpadded) out_features per layer
    return arrays, dims


@functools.partial(jax.jit, static_argnames=("dims",))
def model_forward(x, prep, dims):
    # TODO(synk): the reference Model feeds the pooled (B,C,1,1) tensor into Linear(60,30)/
    # Linear(80,40), which is shape-inconsistent in PyTorch (it cannot run as written); we keep
    # the previously-validated semantics of broadcasting the pooled scalar across the expected
    # in_features, which is what the in-kernel rowsum factorization for layers 2/3 implements.
    wt1, vecs = prep
    n1, n2, n3 = dims
    B, C, H, kin = x.shape
    bc = B * C
    M = bc * H
    npad = wt1.shape[1]

    x2 = x.reshape(M, kin).astype(jnp.float32)   # no host-side lane padding

    kernel = functools.partial(_fused_kernel, bc=bc, h=H, n1=n1, n2=n2, n3=n3)

    out = pl.pallas_call(
        kernel,
        out_shape=jax.ShapeDtypeStruct((bc, npad), jnp.float32),
        grid=(1,),
        in_specs=[
            pl.BlockSpec((M, kin), lambda i: (0, 0)),     # last dim == full array dim (150)
            pl.BlockSpec((kin, npad), lambda i: (0, 0)),  # 2nd-minor == full array dim (150)
            pl.BlockSpec((8, npad), lambda i: (0, 0)),    # packed small vectors
        ],
        out_specs=pl.BlockSpec((bc, npad), lambda i: (0, 0)),
        compiler_params=pltpu.CompilerParams(dimension_semantics=("arbitrary",)),
    )(x2, wt1, vecs)

    # out[:, j] (j<3) = pooled output of layer j, ordered as flat (B, C).
    # (bc, 3) -> (3, bc) -> (3B, C, 1, 1) == torch.cat([v1, v2, v3], dim=0)
    return out[:, :3].T.reshape(3 * B, C, 1, 1)


# ---------------- pure-JAX reference for correctness check ----------------
def _block_ref(x, w, b):
    y = jax.nn.relu(jnp.einsum("bchk,ok->bcho", x, w, precision=lax.Precision.HIGHEST) + b)
    return jnp.mean(y, axis=(2, 3), keepdims=True)


def _model_ref(x, params):
    (w1, b1), (w2, b2), (w3, b3) = params
    B, C = x.shape[0], x.shape[1]
    v1 = _block_ref(x, w1, b1)
    v2 = _block_ref(jnp.broadcast_to(v1, (B, C, 1, 60)), w2, b2)
    v3 = _block_ref(jnp.broadcast_to(v2, (B, C, 1, 80)), w3, b3)
    return jnp.concatenate([v1, v2, v3], axis=0)


if __name__ == "__main__":
    key = jax.random.PRNGKey(0)
    k = jax.random.split(key, 8)

    B, C, H = 2, 4, 8
    # conv1 expects Linear in_features = 2 * 75 = 150 on the last axis.
    x = jax.random.normal(k[0], (B, C, H, 150), dtype=jnp.float32)

    # Deterministic synthetic parameters (PyTorch-Linear shapes: (out_features, in_features)).
    def init_linear(kw, kb, out_f, in_f):
        bound = 1.0 / (in_f ** 0.5)
        w = jax.random.uniform(kw, (out_f, in_f), jnp.float32, -bound, bound)
        b = jax.random.uniform(kb, (out_f,), jnp.float32, -bound, bound)
        return w, b

    params = (
        init_linear(k[1], k[2], 75, 150),   # conv1: Linear(150, 75)
        init_linear(k[3], k[4], 30, 60),    # conv2: Linear(60, 30)
        init_linear(k[5], k[6], 40, 80),    # conv3: Linear(80, 40)
    )

    prep, dims = prepare_params(params)
    out = model_forward(x, prep, dims)
    out = jax.block_until_ready(out)

    ref = _model_ref(x, params)
    assert out.shape == (3 * B, C, 1, 1), out.shape
    assert jnp.allclose(out, ref, rtol=1e-5, atol=1e-5), float(jnp.max(jnp.abs(out - ref)))

    print("KERNEL_OK")
</pallas_src>

<mosaic_0001>
module attributes {stable_mosaic.version = 11 : i64} {
  func.func @_fused_kernel(%arg0: i32, %arg1: memref<64x150xf32, #tpu.memory_space<vmem>>, %arg2: memref<150x128xf32, #tpu.memory_space<vmem>>, %arg3: memref<8x128xf32, #tpu.memory_space<vmem>>, %arg4: memref<8x128xf32, #tpu.memory_space<vmem>>) attributes {dimension_semantics = [#tpu.dimension_semantics<arbitrary>], iteration_bounds = array<i64: 1>, scalar_prefetch = 0 : i64, scratch_operands = 0 : i64, tpu.core_type = #tpu.core_type<tc>, window_params = [{pipeline_mode = #tpu.pipeline_mode<synchronous>, transform_indices = @transform_0, window_bounds = array<i64: 64, 150>}, {pipeline_mode = #tpu.pipeline_mode<synchronous>, transform_indices = @transform_1, window_bounds = array<i64: 150, 128>}, {pipeline_mode = #tpu.pipeline_mode<synchronous>, transform_indices = @transform_2, window_bounds = array<i64: 8, 128>}, {pipeline_mode = #tpu.pipeline_mode<synchronous>, transform_indices = @transform_3, window_bounds = array<i64: 8, 128>}]} {
    %c0 = arith.constant 0 : index
    %c0_0 = arith.constant 0 : index
    %0 = vector.load %arg1[%c0, %c0_0] : memref<64x150xf32, #tpu.memory_space<vmem>>, vector<64x150xf32>
    %c0_1 = arith.constant 0 : index
    %c0_2 = arith.constant 0 : index
    %1 = vector.load %arg2[%c0_1, %c0_2] : memref<150x128xf32, #tpu.memory_space<vmem>>, vector<150x128xf32>
    %cst = arith.constant dense<0.000000e+00> : vector<64x128xf32>
    %2 = tpu.matmul %0, %1, %cst {dimension_numbers = #tpu.dot_dimension_numbers<[1], [0], [0], [1], [0, 0, 1, 1], [], []>} : vector<64x150xf32>, vector<150x128xf32>, vector<64x128xf32> -> vector<64x128xf32>
    %c0_3 = arith.constant 0 : index
    %c0_4 = arith.constant 0 : index
    %3 = vector.load %arg3[%c0_3, %c0_4] : memref<8x128xf32, #tpu.memory_space<vmem>>, vector<1x128xf32>
    %4 = vector.broadcast %3 : vector<1x128xf32> to vector<64x128xf32>
    %5 = arith.addf %2, %4 : vector<64x128xf32>
    %cst_5 = arith.constant 0.000000e+00 : f32
    %6 = vector.broadcast %cst_5 : f32 to vector<64x128xf32>
    %7 = arith.maximumf %5, %6 : vector<64x128xf32>
    %8 = vector.shape_cast %7 : vector<64x128xf32> to vector<8x8x128xf32>
    %cst_6 = arith.constant dense<0.000000e+00> : vector<8x128xf32>
    %9 = vector.multi_reduction <add>, %8, %cst_6 [1] : vector<8x8x128xf32> to vector<8x128xf32>
    %cst_7 = arith.constant dense<0.000000e+00> : vector<8xf32>
    %10 = vector.multi_reduction <add>, %9, %cst_7 [1] : vector<8x128xf32> to vector<8xf32>
    %11 = vector.shape_cast %10 : vector<8xf32> to vector<8x1xf32>
    %cst_8 = arith.constant 0.00166666671 : f32
    %12 = vector.broadcast %cst_8 : f32 to vector<8x1xf32>
    %13 = arith.mulf %11, %12 : vector<8x1xf32>
    %c1 = arith.constant 1 : index
    %c0_9 = arith.constant 0 : index
    %14 = vector.load %arg3[%c1, %c0_9] : memref<8x128xf32, #tpu.memory_space<vmem>>, vector<1x128xf32>
    %15 = vector.broadcast %13 : vector<8x1xf32> to vector<8x128xf32>
    %16 = vector.broadcast %14 : vector<1x128xf32> to vector<8x128xf32>
    %17 = arith.mulf %15, %16 : vector<8x128xf32>
    %c2 = arith.constant 2 : index
    %c0_10 = arith.constant 0 : index
    %18 = vector.load %arg3[%c2, %c0_10] : memref<8x128xf32, #tpu.memory_space<vmem>>, vector<1x128xf32>
    %19 = vector.broadcast %18 : vector<1x128xf32> to vector<8x128xf32>
    %20 = arith.addf %17, %19 : vector<8x128xf32>
    %cst_11 = arith.constant 0.000000e+00 : f32
    %21 = vector.broadcast %cst_11 : f32 to vector<8x128xf32>
    %22 = arith.maximumf %20, %21 : vector<8x128xf32>
    %cst_12 = arith.constant dense<0.000000e+00> : vector<8xf32>
    %23 = vector.multi_reduction <add>, %22, %cst_12 [1] : vector<8x128xf32> to vector<8xf32>
    %24 = vector.shape_cast %23 : vector<8xf32> to vector<8x1xf32>
    %cst_13 = arith.constant 0.0333333351 : f32
    %25 = vector.broadcast %cst_13 : f32 to vector<8x1xf32>
    %26 = arith.mulf %24, %25 : vector<8x1xf32>
    %c3 = arith.constant 3 : index
    %c0_14 = arith.constant 0 : index
    %27 = vector.load %arg3[%c3, %c0_14] : memref<8x128xf32, #tpu.memory_space<vmem>>, vector<1x128xf32>
    %28 = vector.broadcast %26 : vector<8x1xf32> to vector<8x128xf32>
    %29 = vector.broadcast %27 : vector<1x128xf32> to vector<8x128xf32>
    %30 = arith.mulf %28, %29 : vector<8x128xf32>
    %c4 = arith.constant 4 : index
    %c0_15 = arith.constant 0 : index
    %31 = vector.load %arg3[%c4, %c0_15] : memref<8x128xf32, #tpu.memory_space<vmem>>, vector<1x128xf32>
    %32 = vector.broadcast %31 : vector<1x128xf32> to vector<8x128xf32>
    %33 = arith.addf %30, %32 : vector<8x128xf32>
    %cst_16 = arith.constant 0.000000e+00 : f32
    %34 = vector.broadcast %cst_16 : f32 to vector<8x128xf32>
    %35 = arith.maximumf %33, %34 : vector<8x128xf32>
    %cst_17 = arith.constant dense<0.000000e+00> : vector<8xf32>
    %36 = vector.multi_reduction <add>, %35, %cst_17 [1] : vector<8x128xf32> to vector<8xf32>
    %37 = vector.shape_cast %36 : vector<8xf32> to vector<8x1xf32>
    %cst_18 = arith.constant 2.500000e-02 : f32
    %38 = vector.broadcast %cst_18 : f32 to vector<8x1xf32>
    %39 = arith.mulf %37, %38 : vector<8x1xf32>
    %40 = tpu.iota {dimensions = array<i32: 1>} : vector<8x128xi32>
    %c0_i32 = arith.constant 0 : i32
    %41 = vector.broadcast %c0_i32 : i32 to vector<8x128xi32>
    %42 = arith.cmpi eq, %40, %41 : vector<8x128xi32>
    %c1_i32 = arith.constant 1 : i32
    %43 = vector.broadcast %c1_i32 : i32 to vector<8x128xi32>
    %44 = arith.cmpi eq, %40, %43 : vector<8x128xi32>
    %c2_i32 = arith.constant 2 : i32
    %45 = vector.broadcast %c2_i32 : i32 to vector<8x128xi32>
    %46 = arith.cmpi eq, %40, %45 : vector<8x128xi32>
    %cst_19 = arith.constant 0.000000e+00 : f32
    %47 = vector.shape_cast %39 : vector<8x1xf32> to vector<8x1xf32>
    %48 = vector.broadcast %47 : vector<8x1xf32> to vector<8x128xf32>
    %49 = vector.broadcast %cst_19 : f32 to vector<8x128xf32>
    %50 = arith.select %46, %48, %49 : vector<8x128xi1>, vector<8x128xf32>
    %51 = vector.shape_cast %26 : vector<8x1xf32> to vector<8x1xf32>
    %52 = vector.broadcast %51 : vector<8x1xf32> to vector<8x128xf32>
    %53 = arith.select %44, %52, %50 : vector<8x128xi1>, vector<8x128xf32>
    %54 = vector.shape_cast %13 : vector<8x1xf32> to vector<8x1xf32>
    %55 = vector.broadcast %54 : vector<8x1xf32> to vector<8x128xf32>
    %56 = arith.select %42, %55, %53 : vector<8x128xi1>, vector<8x128xf32>
    %c0_20 = arith.constant 0 : index
    %c0_21 = arith.constant 0 : index
    %57 = vector.load %arg4[%c0_20, %c0_21] : memref<8x128xf32, #tpu.memory_space<vmem>>, vector<8x128xf32>
    tpu.vector_store %arg4[%c0_20, %c0_21], %56 {strides = array<i32>} : memref<8x128xf32, #tpu.memory_space<vmem>>, vector<8x128xf32>,
    return
  }
  func.func @transform_0(%arg0: i32) -> (i32, i32) {
    %c0_i32 = arith.constant 0 : i32
    %c0_i32_0 = arith.constant 0 : i32
    %c0_i32_1 = arith.constant 0 : i32
    return %c0_i32, %c0_i32_0 : i32, i32
  }
  func.func @transform_1(%arg0: i32) -> (i32, i32) {
    %c0_i32 = arith.constant 0 : i32
    %c0_i32_0 = arith.constant 0 : i32
    %c0_i32_1 = arith.constant 0 : i32
    return %c0_i32, %c0_i32_0 : i32, i32
  }
  func.func @transform_2(%arg0: i32) -> (i32, i32) {
    %c0_i32 = arith.constant 0 : i32
    %c0_i32_0 = arith.constant 0 : i32
    %c0_i32_1 = arith.constant 0 : i32
    return %c0_i32, %c0_i32_0 : i32, i32
  }
  func.func @transform_3(%arg0: i32) -> (i32, i32) {
    %c0_i32 = arith.constant 0 : i32
    %c0_i32_0 = arith.constant 0 : i32
    %c0_i32_1 = arith.constant 0 : i32
    return %c0_i32, %c0_i32_0 : i32, i32
  }
}

</mosaic_0001>

<bundles_post_ra>
// kernel: model_forward.1
= control target key start
LH: loop header
LB: loop body
LE: loop exit
PB: predicated region body
PF: predicated region fallthrough
CT: control target
= control target key end

     0   :  { %8 = vsyncpa [#allocation3], 0  ;;  %s566_s0 = inlined_call_operand.hbm [shape: f32[64,150], index: 0, kind: input, shape index: {}]   ;;  %s567_s1 = inlined_call_operand.hbm [shape: f32[150,128], index: 1, kind: input, shape index: {}]   ;;  %s568_s2 = inlined_call_operand.hbm [shape: f32[8,128], index: 2, kind: input, shape index: {}]   ;;  %s569_s3 = inlined_call_operand.vmem [shape: f32[8,128], index: 3, kind: output, shape index: {}]  }
   0x1   :  { %9 = vsyncpa [#allocation5], 0  ;;  %s480_s12 = smov [#allocation4]  }
   0x2   :  { %s27_s13 = sshll.u32 %s480_s12, 4  ;;  %s28_s13 = int_to_ptr.vmem [resolvable:$true] %s27_s13 }
   0x3   :  { %s424_s14 = scalar_lea.vmem %s28_s13, 2432  ;;  %p429_p1 = scmp.lt.s32.totalorder %s28_s13, %s28_s13 }
   0x4   :  { %p425_p0 = scmp.ne.s32.totalorder %s28_s13, %s424_s14  ;;  %p430_p2 = scmp.lt.s32.totalorder %s424_s14, %s424_s14 }
   0x6   :  { %p431_p3 = por %p430_p2, %p429_p1 }
   0x8   :  { %p432_p4 = pnand %p431_p3, %p425_p0 }
   0xa   :  { %435 = shalt.err (!%p432_p4)
}
   0xb   :  { %s481_s15 = smov 128   ;;  %s482_s16 = smov 8  }
   0xc   :  { %33 = dma.hbm_to_vmem [thread:$0]  %s567_s1, 2432, %s28_s13, [#allocation5], %s481_s15, %s481_s15, %s482_s16  }
   0xd   :  { %s483_s19 = smov [#allocation2]  }
   0xe   :  { %s15_s20 = sshll.u32 %s483_s19, 4  ;;  %s16_s20 = int_to_ptr.vmem [resolvable:$true] %s15_s20 }
   0xf   :  { %s444_s21 = scalar_lea.vmem %s16_s20, 2048  ;;  %p449_p6 = scmp.lt.s32.totalorder %s16_s20, %s16_s20 }
  0x10   :  { %p445_p5 = scmp.ne.s32.totalorder %s16_s20, %s444_s21  ;;  %p450_p7 = scmp.lt.s32.totalorder %s444_s21, %s444_s21 }
  0x12   :  { %p451_p8 = por %p450_p7, %p449_p6 }
  0x14   :  { %p452_p9 = pnand %p451_p8, %p445_p5 }
  0x16   :  { %455 = shalt.err (!%p452_p9)
}
  0x17   :  { %s484_s22 = smov 256   ;;  %s485_s23 = smov 16  }
  0x18   :  { %21 = dma.hbm_to_vmem [thread:$0]  %s566_s0, 2048, %s16_s20, [#allocation3], %s484_s22, %s484_s22, %s485_s23  }
  0x19   :  { %s486_s26 = smov [#allocation6]  }
  0x1a   :  { %s40_s27 = sshll.u32 %s486_s26, 4  ;;  %s41_s27 = int_to_ptr.vmem [resolvable:$true] %s40_s27 }
  0x1b   :  { %s464_s1 = scalar_lea.vmem %s41_s27, 128  ;;  %p469_p11 = scmp.lt.s32.totalorder %s41_s27, %s41_s27 }
  0x1c   :  { %p465_p10 = scmp.ne.s32.totalorder %s41_s27, %s464_s1  ;;  %p470_p12 = scmp.lt.s32.totalorder %s464_s1, %s464_s1 }
  0x1e   :  { %p471_p13 = por %p470_p12, %p469_p11 }
  0x20   :  { %p472_p0 = pnand %p471_p13, %p465_p10 }
  0x22   :  { %475 = shalt.err (!%p472_p0)
}
  0x23   :  { %43 = dma.hbm_to_vmem [thread:$0]  %s568_s2, 128, %s41_s27, [#allocation5]  }
  0x24   :  { %476 = dma.done.wait [#allocation3], 2048  }
  0x25   :  { %477 = vsyncadd [#allocation3], 4294965248 }
  0x26   :  { %478 = dma.done.wait [#allocation5], 2560  }
  0x27   :  { %479 = vsyncadd [#allocation5], 4294964736  ;;  %v487_v0 = vmov 0.0   ;;  %v84_v1 = vld [vmem:[#allocation4 + $0x78] sm:$0xff]  ;;  %v83_v2 = vld [vmem:[#allocation4 + $0x70] sm:$0xff]  ;;  %vm118_vm0 = vcmask 1045504  }
  0x28   :  { %122 = vmatprep.subr.mxu0 %v487_v0  ;;  %370 = vmatprep.subr.mxu1 %v487_v0  ;;  %v82_v3 = vld [vmem:[#allocation4 + $0x68] sm:$0xff]  ;;  %v81_v4 = vld [vmem:[#allocation4 + $0x60] sm:$0xff]  ;;  %v80_v5 = vld [vmem:[#allocation4 + $0x58] sm:$0xff]  ;;  %vm93_vm1 = vcmask 179200   ;;  %vm291_vm2 = vcmask 1041409   ;;  %vm293_vm3 = vcmask 1042434  }
  0x29   :  { %123 = vmatpush1.msra.mxu0 %v84_v1  ;;  %389 = vmatpush1.msra.mxu1 %v84_v1  ;;  %v79_v6 = vld [vmem:[#allocation4 + $0x50] sm:$0xff]  ;;  %v78_v7 = vld [vmem:[#allocation4 + $0x48] sm:$0xff]  ;;  %v77_v8 = vld [vmem:[#allocation4 + $0x40] sm:$0xff]  ;;  %vm295_vm4 = vcmask 1043459   ;;  %vm297_vm5 = vcmask 1044484   ;;  %vm299_vm6 = vcmask 1045509  }
  0x2a   :  { %124 = vmatprep.subr.mxu0 %v487_v0  ;;  %371 = vmatprep.subr.mxu1 %v487_v0  ;;  %v76_v9 = vld [vmem:[#allocation4 + $0x38] sm:$0xff]  ;;  %v75_v10 = vld [vmem:[#allocation4 + $0x30] sm:$0xff]  ;;  %v74_v11 = vld [vmem:[#allocation4 + $0x28] sm:$0xff]  ;;  %vm301_vm7 = vcmask 1046534   ;;  %vm303_vm8 = vcmask 1047559  }
  0x2b   :  { %125 = vmatpush1.msra.mxu0 %v83_v2  ;;  %390 = vmatpush1.msra.mxu1 %v83_v2  ;;  %v73_v12 = vld [vmem:[#allocation4 + $0x20] sm:$0xff]  ;;  %v72_v13 = vld [vmem:[#allocation4 + $0x18] sm:$0xff]  ;;  %v71_v14 = vld [vmem:[#allocation4 + $0x10] sm:$0xff] }
  0x2c   :  { %126 = vmatprep.subr.mxu0 %v487_v0  ;;  %372 = vmatprep.subr.mxu1 %v487_v0  ;;  %v70_v15 = vld [vmem:[#allocation4 + $0x8] sm:$0xff]  ;;  %v69_v16 = vld [vmem:[#allocation4] sm:$0xff]  ;;  %v87_v17 = vld [vmem:[#allocation4 + $0x90] sm:$0x3f] }
  0x2d   :  { %127 = vmatpush1.msra.mxu0 %v82_v3  ;;  %391 = vmatpush1.msra.mxu1 %v82_v3  ;;  %v86_v18 = vld [vmem:[#allocation4 + $0x88] sm:$0xff]  ;;  %v85_v19 = vld [vmem:[#allocation4 + $0x80] sm:$0xff]  ;;  %v56_v24 = vld [vmem:[#allocation2 + $0x18] sm:$0xff] }
  0x2e   :  { %128 = vmatprep.subr.mxu0 %v487_v0  ;;  %373 = vmatprep.subr.mxu1 %v487_v0  ;;  %v54_v20 = vld [vmem:[#allocation2 + $0x8] sm:$0xff]  ;;  %v53_v22 = vld [vmem:[#allocation2] sm:$0xff]  ;;  %v64_v25 = vld [vmem:[#allocation2 + $0x58] sm:$0xff] }
  0x2f   :  { %129 = vmatpush1.msra.mxu0 %v81_v4  ;;  %392 = vmatpush1.msra.mxu1 %v81_v4  ;;  %v62_v21 = vld [vmem:[#allocation2 + $0x48] sm:$0xff]  ;;  %v61_v23 = vld [vmem:[#allocation2 + $0x40] sm:$0xff]  ;;  %v55_v26 = vld [vmem:[#allocation2 + $0x10] sm:$0xff] }
  0x30   :  { %130 = vmatprep.subr.mxu0 %v487_v0  ;;  %374 = vmatprep.subr.mxu1 %v487_v0  ;;  %v63_v27 = vld [vmem:[#allocation2 + $0x50] sm:$0xff]  ;;  %v58_v28 = vld [vmem:[#allocation2 + $0x28] sm:$0xff]  ;;  %v57_v30 = vld [vmem:[#allocation2 + $0x20] sm:$0xff] }
  0x31   :  { %131 = vmatpush1.msra.mxu0 %v80_v5  ;;  %393 = vmatpush1.msra.mxu1 %v80_v5  ;;  %v66_v29 = vld [vmem:[#allocation2 + $0x68] sm:$0xff]  ;;  %v65_v31 = vld [vmem:[#allocation2 + $0x60] sm:$0xff]  ;;  %v60_v32 = vld [vmem:[#allocation2 + $0x38] sm:$0xff] }
  0x32   :  { %132 = vmatprep.subr.mxu0 %v487_v0  ;;  %375 = vmatprep.subr.mxu1 %v487_v0  ;;  %v68_v33 = vld [vmem:[#allocation2 + $0x78] sm:$0xff]  ;;  %v59_v34 = vld [vmem:[#allocation2 + $0x30] sm:$0xff] }
  0x33   :  { %133 = vmatpush1.msra.mxu0 %v79_v6  ;;  %394 = vmatpush1.msra.mxu1 %v79_v6  ;;  %v67_v35 = vld [vmem:[#allocation2 + $0x70] sm:$0xff]  ;;  %v356_v36 = vld [vmem:[#allocation6] ss:$0 sm:$0xff] }
  0x34   :  { %134 = vmatprep.subr.mxu0 %v487_v0  ;;  %376 = vmatprep.subr.mxu1 %v487_v0 }
  0x35   :  { %135 = vmatpush1.msra.mxu0 %v78_v7  ;;  %395 = vmatpush1.msra.mxu1 %v78_v7 }
  0x36   :  { %136 = vmatprep.subr.mxu0 %v487_v0  ;;  %377 = vmatprep.subr.mxu1 %v487_v0 }
  0x37   :  { %137 = vmatpush1.msra.mxu0 %v77_v8  ;;  %396 = vmatpush1.msra.mxu1 %v77_v8 }
  0x38   :  { %138 = vmatprep.subr.mxu0 %v487_v0  ;;  %378 = vmatprep.subr.mxu1 %v487_v0 }
  0x39   :  { %139 = vmatpush1.msra.mxu0 %v76_v9  ;;  %397 = vmatpush1.msra.mxu1 %v76_v9 }
  0x3a   :  { %140 = vmatprep.subr.mxu0 %v487_v0  ;;  %379 = vmatprep.subr.mxu1 %v487_v0 }
  0x3b   :  { %141 = vmatpush1.msra.mxu0 %v75_v10  ;;  %398 = vmatpush1.msra.mxu1 %v75_v10 }
  0x3c   :  { %142 = vmatprep.subr.mxu0 %v487_v0  ;;  %380 = vmatprep.subr.mxu1 %v487_v0 }
  0x3d   :  { %143 = vmatpush1.msra.mxu0 %v74_v11  ;;  %399 = vmatpush1.msra.mxu1 %v74_v11 }
  0x3e   :  { %144 = vmatprep.subr.mxu0 %v487_v0  ;;  %381 = vmatprep.subr.mxu1 %v487_v0 }
  0x3f   :  { %145 = vmatpush1.msra.mxu0 %v73_v12  ;;  %400 = vmatpush1.msra.mxu1 %v73_v12 }
  0x40   :  { %146 = vmatprep.subr.mxu0 %v487_v0  ;;  %382 = vmatprep.subr.mxu1 %v487_v0 }
  0x41   :  { %147 = vmatpush1.msra.mxu0 %v72_v13  ;;  %401 = vmatpush1.msra.mxu1 %v72_v13 }
  0x42   :  { %148 = vmatprep.subr.mxu0 %v487_v0  ;;  %383 = vmatprep.subr.mxu1 %v487_v0 }
  0x43   :  { %149 = vmatpush1.msra.mxu0 %v71_v14  ;;  %402 = vmatpush1.msra.mxu1 %v71_v14 }
  0x44   :  { %150 = vmatprep.subr.mxu0 %v487_v0  ;;  %384 = vmatprep.subr.mxu1 %v487_v0 }
  0x45   :  { %151 = vmatpush1.msra.mxu0 %v70_v15  ;;  %403 = vmatpush1.msra.mxu1 %v70_v15 }
  0x46   :  { %152 = vmatprep.subr.mxu0 %v487_v0  ;;  %385 = vmatprep.subr.mxu1 %v487_v0 }
  0x47   :  { %153 = vmatpush1.msra.mxu0 %v69_v16  ;;  %404 = vmatpush1.msra.mxu1 %v69_v16 }
  0x48   :  { %180 = vmatprep.subr.mxu0 %v487_v0  ;;  %386 = vmatprep.subr.mxu1 %v487_v0 }
  0x49   :  { %357 = vmatpush2.msk.msra.mxu0 %vm118_vm0, %v87_v17  ;;  %405 = vmatpush2.msk.msra.mxu1 %vm118_vm0, %v87_v17 }
  0x4a   :  { %182 = vmatprep.subr.mxu0 %v487_v0  ;;  %387 = vmatprep.subr.mxu1 %v487_v0 }
  0x4b   :  { %183 = vmatpush2.msra.mxu0 %v86_v18  ;;  %406 = vmatpush2.msra.mxu1 %v86_v18 }
  0x4c   :  { %184 = vmatprep.subr.mxu0 %v487_v0  ;;  %388 = vmatprep.subr.mxu1 %v487_v0 }
  0x4d   :  { %185 = vmatpush2.msra.mxu0 %v85_v19  ;;  %407 = vmatpush2.msra.mxu1 %v85_v19 }
  0x4e   :  { %358 = vmatprep.mubr.msk.f32.mxu0 %vm93_vm1, %v54_v20  ;;  %362 = vmatprep.mubr.msk.f32.mxu1 %vm93_vm1, %v62_v21 }
  0x4f   :  { %187 = vmatmul.mubr.f32.vlgmr.msra.gmra.mxu0 %v53_v22  ;;  %207 = vmatmul.mubr.f32.vlgmr.msra.gmra.mxu1 %v61_v23 }
  0x50   :  { %359 = vmatprep.mubr.msk.f32.mxu0 %vm93_vm1, %v56_v24  ;;  %363 = vmatprep.mubr.msk.f32.mxu1 %vm93_vm1, %v64_v25 }
  0x53   :  { %192 = vmatmul.mubr.f32.gmra.mxu0 %v55_v26  ;;  %212 = vmatmul.mubr.f32.gmra.mxu1 %v63_v27 }
  0x54   :  { %360 = vmatprep.mubr.msk.f32.mxu0 %vm93_vm1, %v58_v28  ;;  %364 = vmatprep.mubr.msk.f32.mxu1 %vm93_vm1, %v66_v29 }
  0x57   :  { %197 = vmatmul.mubr.f32.gmra.mxu0 %v57_v30  ;;  %217 = vmatmul.mubr.f32.gmra.mxu1 %v65_v31 }
  0x58   :  { %361 = vmatprep.mubr.msk.f32.mxu0 %vm93_vm1, %v60_v32  ;;  %365 = vmatprep.mubr.msk.f32.mxu1 %vm93_vm1, %v68_v33 }
  0x5b   :  { %202 = vmatmul.mubr.f32.gmra.mxu0 %v59_v34  ;;  %222 = vmatmul.mubr.f32.gmra.mxu1 %v67_v35 }
 0x10f   :  { %v188_v37 = vpop.f32.mrf.mxu0  ;;  %v208_v38 = vpop.f32.mrf.mxu1 }
 0x110   :  { %v189_v39 = vadd.f32 %v356_v36, %v188_v37  ;;  %v209_v40 = vadd.f32 %v356_v36, %v208_v38 }
 0x111   :  { %v190_v41 = vpop.f32.mrf.mxu0  ;;  %v210_v42 = vpop.f32.mrf.mxu1 }
 0x112   :  { %v227_v43 = vmax.f32 %v189_v39, 0.0  ;;  %v231_v47 = vmax.f32 %v209_v40, 0.0 }
 0x113   :  { %v193_v44 = vpop.f32.mrf.mxu0  ;;  %v213_v45 = vpop.f32.mrf.mxu1 }
 0x114   :  { %v235_v46 = vrot.slane %v227_v43, 4  ;;  %v194_v48 = vadd.f32 %v356_v36, %v193_v44  ;;  %v214_v49 = vadd.f32 %v356_v36, %v213_v45  ;;  %v259_v57 = vrot.slane %v231_v47, 4 }
 0x115   :  { %v195_v50 = vpop.f32.mrf.mxu0  ;;  %v215_v51 = vpop.f32.mrf.mxu1 }
 0x116   :  { %v228_v52 = vmax.f32 %v194_v48, 0.0  ;;  %v232_v53 = vmax.f32 %v214_v49, 0.0  ;;  %v236_v56 = vadd.f32 %v235_v46, %v227_v43  ;;  %v260_v6 = vadd.f32 %v259_v57, %v231_v47 }
 0x117   :  { %v198_v54 = vpop.f32.mrf.mxu0  ;;  %v218_v55 = vpop.f32.mrf.mxu1 }
 0x118   :  { %v241_v58 = vrot.slane %v228_v52, 4  ;;  %v265_v59 = vrot.slane %v232_v53, 4  ;;  %v199_v60 = vadd.f32 %v356_v36, %v198_v54  ;;  %v219_v61 = vadd.f32 %v356_v36, %v218_v55 }
 0x119   :  { %v200_v62 = vpop.f32.mrf.mxu0  ;;  %v220_v63 = vpop.f32.mrf.mxu1  ;;  %v237_v5 = vrot.slane %v236_v56, 2  ;;  %v261_v21 = vrot.slane %v260_v6, 2 }
 0x11a   :  { %v242_v0 = vadd.f32 %v241_v58, %v228_v52  ;;  %v229_v1 = vmax.f32 %v199_v60, 0.0  ;;  %v233_v2 = vmax.f32 %v219_v61, 0.0  ;;  %v266_v8 = vadd.f32 %v265_v59, %v232_v53  ;;  %v366_v60 = vld [vmem:[#allocation6 + $0x1] ss:$0 sm:$0xff]  ;;  %v367_v63 = vld [vmem:[#allocation6 + $0x2] ss:$0 sm:$0xff] }
 0x11b   :  { %v203_v3 = vpop.f32.mrf.mxu0  ;;  %v223_v4 = vpop.f32.mrf.mxu1  ;;  %v238_v20 = vadd.f32 %v237_v5, %v236_v56  ;;  %v262_v32 = vadd.f32 %v261_v21, %v260_v6  ;;  %v369_v6 = vld [vmem:[#allocation6 + $0x4] ss:$0 sm:$0xff] }
 0x11c   :  { %v243_v7 = vrot.slane %v242_v0, 2  ;;  %v247_v9 = vrot.slane %v229_v1, 4  ;;  %v271_v10 = vrot.slane %v233_v2, 4  ;;  %v204_v11 = vadd.f32 %v356_v36, %v203_v3  ;;  %v368_v3 = vld [vmem:[#allocation6 + $0x3] ss:$0 sm:$0xff] }
 0x11d   :  { %v224_v12 = vadd.f32 %v356_v36, %v223_v4  ;;  %v205_v13 = vpop.f32.mrf.mxu0  ;;  %v225_v14 = vpop.f32.mrf.mxu1  ;;  %v267_v22 = vrot.slane %v266_v8, 2  ;;  %v239_v31 = vrot.slane %v238_v20, 1  ;;  %v263_v41 = vrot.slane %v262_v32, 1 }
 0x11e   :  { %v244_v15 = vadd.f32 %v243_v7, %v242_v0  ;;  %v248_v16 = vadd.f32 %v247_v9, %v229_v1  ;;  %v272_v17 = vadd.f32 %v271_v10, %v233_v2  ;;  %v230_v18 = vmax.f32 %v204_v11, 0.0 }
 0x11f   :  { %v234_v19 = vmax.f32 %v224_v12, 0.0  ;;  %v268_v33 = vadd.f32 %v267_v22, %v266_v8  ;;  %v240_v43 = vadd.f32 %v239_v31, %v238_v20  ;;  %v264_v50 = vadd.f32 %v263_v41, %v262_v32 }
 0x120   :  { %v249_v23 = vrot.slane %v248_v16, 2  ;;  %v253_v24 = vrot.slane %v230_v18, 4  ;;  %v273_v26 = vrot.slane %v272_v17, 2  ;;  %v245_v27 = vrot.slane %v244_v15, 1 }
 0x121   :  { %v277_v25 = vrot.slane %v234_v19, 4  ;;  %v269_v44 = vrot.slane %v268_v33, 1  ;;  %v341_v10 = vlaneseq }
 0x122   :  { %v250_v28 = vadd.f32 %v249_v23, %v248_v16  ;;  %v254_v29 = vadd.f32 %v253_v24, %v230_v18  ;;  %v274_v37 = vadd.f32 %v273_v26, %v272_v17  ;;  %v246_v38 = vadd.f32 %v245_v27, %v244_v15 }
 0x123   :  { %v278_v30 = vadd.f32 %v277_v25, %v234_v19  ;;  %v270_v52 = vadd.f32 %v269_v44, %v268_v33  ;;  %v342_v11 = vand.u32 127, %v341_v10 }
 0x124   :  { %v251_v34 = vrot.slane %v250_v28, 1  ;;  %v255_v35 = vrot.slane %v254_v29, 2  ;;  %v275_v46 = vrot.slane %v274_v37, 1  ;;  %v292_v47 = vsel %vm291_vm2, %v246_v38, %v240_v43 }
 0x125   :  { %v279_v36 = vrot.slane %v278_v30, 2  ;;  %vm345_vm9 = vcmp.eq.s32.totalorder %v342_v11, 2  ;;  %vm344_vm10 = vcmp.eq.s32.totalorder %v342_v11, 1  ;;  %vm343_vm11 = vcmp.eq.s32.totalorder %v342_v11, 0 }
 0x126   :  { %v256_v39 = vadd.f32 %v255_v35, %v254_v29  ;;  %v252_v42 = vadd.f32 %v251_v34, %v250_v28  ;;  %v276_v54 = vadd.f32 %v275_v46, %v274_v37 }
 0x127   :  { %v280_v40 = vadd.f32 %v279_v36, %v278_v30 }
 0x128   :  { %v257_v45 = vrot.slane %v256_v39, 1  ;;  %v294_v51 = vsel %vm293_vm3, %v252_v42, %v292_v47 }
 0x129   :  { %v281_v49 = vrot.slane %v280_v40, 1 }
 0x12a   :  { %v258_v48 = vadd.f32 %v257_v45, %v256_v39 }
 0x12b   :  { %v282_v56 = vadd.f32 %v281_v49, %v280_v40 }
 0x12c   :  { %v296_v53 = vsel %vm295_vm4, %v258_v48, %v294_v51 }
 0x12d   :  { %v298_v55 = vsel %vm297_vm5, %v264_v50, %v296_v53 }
 0x12e   :  { %v300_v57 = vsel %vm299_vm6, %v270_v52, %v298_v55 }
 0x12f   :  { %v302_v58 = vsel %vm301_vm7, %v276_v54, %v300_v57 }
 0x130   :  { %v304_v59 = vsel %vm303_vm8, %v282_v56, %v302_v58 }
 0x131   :  { %306 = vadd.xlane.f32.xlu0 %v304_v59 }
 0x1ba   :  { %v307_v61 = vpop.xlane.xlu0 %306 }
 0x1bb   :  { %v308_v62 = vmul.f32 0.0016666667, %v307_v61 }
 0x1bd   :  { %v314_v0 = vmul.f32 %v366_v60, %v308_v62 }
 0x1bf   :  { %v320_v1 = vadd.f32 %v367_v63, %v314_v0 }
 0x1c1   :  { %v321_v2 = vmax.f32 %v320_v1, 0.0 }
 0x1c3   :  { %322 = vadd.xlane.f32.xlu0 %v321_v2 }
 0x24c   :  { %v323_v4 = vpop.xlane.xlu0 %322 }
 0x24d   :  { %v324_v5 = vmul.f32 0.033333335, %v323_v4 }
 0x24f   :  { %v330_v7 = vmul.f32 %v368_v3, %v324_v5 }
 0x251   :  { %v336_v8 = vadd.f32 %v369_v6, %v330_v7 }
 0x253   :  { %v337_v9 = vmax.f32 %v336_v8, 0.0 }
 0x255   :  { %338 = vadd.xlane.f32.xlu1 %v337_v9 }
 0x2de   :  { %v339_v12 = vpop.xlane.xlu1 %338 }
 0x2df   :  { %v340_v13 = vmul.f32 0.025, %v339_v12 }
 0x2e1   :  { %v346_v14 = vsel %vm345_vm9, %v340_v13, 0.0 }
 0x2e2   :  { %v347_v15 = vsel %vm344_vm10, %v324_v5, %v346_v14 }
 0x2e3   :  { %v348_v16 = vsel %vm343_vm11, %v308_v62, %v347_v15 }
 0x2e4   :  { %349 = vst [vmem:[%s569_s3] sm:$0xff] %v348_v16 }
 0x2e5   :  { %354 = vsyncpa [#allocation3], 1 }
 0x2e6   :  { %355 = vsyncpa [#allocation5], 1 }

</bundles_post_ra>
